<compile_context>
chip_gen: v6e
topology: v6e:2x2x1
jax: 0.10.0
libtpu: 0.0.40
codegen_flags: <defaults>
</compile_context>

<pallas_src>
import math

import jax
import jax.numpy as jnp
from jax.experimental import pallas as pl
from jax.experimental.pallas import tpu as pltpu


def _round_up(x, m):
    return ((x + m - 1) // m) * m


def _gelu_exact(x):
    # torch.nn.GELU() default = exact erf formulation.
    return 0.5 * x * (1.0 + jax.lax.erf(x * (1.0 / math.sqrt(2.0))))


def adapter_kernel(x_ref, w1_ref, b1_ref, w2_ref, b2_ref, o_ref):
    # x_ref : (tm, Wp)  row tile of the flattened input (native dtype)
    # w1_ref: (Wp, D)   down_project weight, pre-transposed vs. torch
    # b1_ref: (1, D)    down_project bias (f32)
    # w2_ref: (D, Wp)   up_project weight, pre-transposed vs. torch
    # b2_ref: (1, Wp)   up_project bias (f32)
    x = x_ref[...]
    # Down projection: native-dtype operands to the MXU, f32 accumulation.
    h = jnp.dot(x, w1_ref[...], preferred_element_type=jnp.float32)
    h = _gelu_exact(h + b1_ref[...])
    # Up projection: cast activations to the weight dtype for the fast MXU
    # path; accumulate in f32.
    y = jnp.dot(h.astype(w2_ref.dtype), w2_ref[...],
                preferred_element_type=jnp.float32)
    # Residual folded without materializing an f32 copy of the x tile.
    o_ref[...] = (y + b2_ref[...]).astype(o_ref.dtype) + x


def _vmem_limits():
    """(scoped VMEM limit handed to Mosaic, planning budget for tiling)."""
    try:
        phys = pltpu.get_tpu_info().vmem_capacity_bytes
    except Exception:
        phys = 64 * 1024 * 1024          # assume the smallest (v7x: 64 MiB / core)
    limit = min(int(phys * 3 // 4), 96 * 1024 * 1024)
    return limit, int(limit * 0.85)


def _pick_tm(M, W, D, x_bytes, w_bytes, budget, sub):
    """Row tile: big enough for HBM efficiency, small enough for >= ~8 grid
    steps and a VMEM fit, granular on the packed sublane size."""
    # Weights / biases counted with default double-buffering (they are
    # grid-invariant, so only one DMA is ever issued, but both buffers exist).
    weights = 2 * (2 * W * D * w_bytes + (W + D) * 4)

    def fits(tm):
        io = 4 * tm * W * x_bytes        # x + out row tiles, double-buffered
        tmp = tm * (W + D) * 4           # f32 matmul results (y, h)
        return io + tmp + weights <= budget

    # Aim for >= ~8 grid steps (>= 4 per TensorCore on v7x); 512-1024-row
    # tiles already sit at ~85% of the HBM roofline, so cap at 1024.
    tm = min(1024, max(sub, _round_up(pl.cdiv(M, 8), sub)))
    while tm > sub and not fits(tm):
        tm = max(sub, _round_up(tm // 2, sub))
    if not fits(tm):
        # TODO(synk): add a second grid axis over W (column-tiled
        # up-projection) for adapters whose weights alone exceed VMEM.
        raise ValueError(
            "Adapter weights do not fit in VMEM even at the minimum row tile; "
            "a column-tiled (W-split) variant is required for this shape.")
    # Prefer a nearby tile that divides M exactly (no ragged tail block).
    for cand in range(tm, max(sub, tm // 2) - 1, -sub):
        if M % cand == 0:
            return cand
    return tm


def adapter_forward(x, w1, b1, w2, b2, *, tm=None):
    """x: (..., W).  w1: (W, D), b1: (D,), w2: (D, W), b2: (W,).
    Weights are stored pre-transposed ((in_features, out_features)) vs. torch."""
    orig_shape = x.shape
    W = orig_shape[-1]
    D = w1.shape[1]
    M = math.prod(orig_shape[:-1]) if len(orig_shape) > 1 else 1
    x2 = x.reshape(M, W)

    # Lane-dense feature dim: pad W up to a multiple of 128 (no-op for typical
    # adapter widths such as 768 / 1024 / 4096).  Padded columns stay zero
    # through both projections and the residual, and are sliced off below.
    Wp = _round_up(W, 128)
    if Wp != W:
        x2 = jnp.pad(x2, ((0, 0), (0, Wp - W)))
        w1 = jnp.pad(w1, ((0, Wp - W), (0, 0)))
        w2 = jnp.pad(w2, ((0, 0), (0, Wp - W)))
        b2 = jnp.pad(b2, ((0, Wp - W),))

    x_bytes = jnp.dtype(x.dtype).itemsize
    vmem_limit, budget = _vmem_limits()

    # v7x guard: very large f32 adapters would otherwise crowd the row tiles
    # out of 64 MiB VMEM -- hold the weights in bf16 on-chip (MXU-native).
    # TODO(synk): column-tile the up-projection instead if bf16 weights are
    # not acceptable numerically for such shapes.
    if jnp.dtype(w1.dtype) == jnp.float32 and 2 * (2 * Wp * D * 4) > budget // 3:
        w1 = w1.astype(jnp.bfloat16)
        w2 = w2.astype(jnp.bfloat16)
    w_bytes = jnp.dtype(w1.dtype).itemsize

    sub = max(8, 32 // x_bytes)          # 8 rows f32, 16 bf16, 32 int8/fp8
    if tm is None:
        tm = _pick_tm(M, Wp, D, x_bytes, w_bytes, budget, sub)
    steps = pl.cdiv(M, tm)               # ragged last block handled by Pallas

    b1_2d = b1.reshape(1, D).astype(jnp.float32)
    b2_2d = b2.reshape(1, Wp).astype(jnp.float32)

    cost = pl.CostEstimate(
        flops=4 * M * Wp * D + 4 * M * Wp,
        transcendentals=M * D,                      # erf inside the GELU
        bytes_accessed=2 * M * Wp * x_bytes + 2 * Wp * D * w_bytes + (Wp + D) * 4,
    )

    out = pl.pallas_call(
        adapter_kernel,
        out_shape=jax.ShapeDtypeStruct((M, Wp), x.dtype),
        grid=(steps,),
        in_specs=[
            pl.BlockSpec((tm, Wp), lambda i: (i, 0)),   # x row tile (pipelined)
            pl.BlockSpec((Wp, D), lambda i: (0, 0)),    # down_project weight^T
            pl.BlockSpec((1, D), lambda i: (0, 0)),     # down_project bias
            pl.BlockSpec((D, Wp), lambda i: (0, 0)),    # up_project weight^T
            pl.BlockSpec((1, Wp), lambda i: (0, 0)),    # up_project bias
        ],
        out_specs=pl.BlockSpec((tm, Wp), lambda i: (i, 0)),
        cost_estimate=cost,
        compiler_params=pltpu.CompilerParams(
            dimension_semantics=("parallel",),
            vmem_limit_bytes=vmem_limit,
        ),
    )(x2, w1, b1_2d, w2, b2_2d)

    if Wp != W:
        out = out[:, :W]
    return out.reshape(orig_shape)


if __name__ == "__main__":
    # Adapter(width, dim) at small shapes: width = model width, dim = bottleneck.
    width, dim = 32, 8

    key = jax.random.PRNGKey(0)
    kx, kx2, kw1, kw2 = jax.random.split(key, 4)

    # torch init: weight ~ N(0, 0.01), bias = 0; stored pre-transposed.
    w1 = (0.01 * jax.random.normal(kw1, (width, dim))).astype(jnp.float32)
    b1 = jnp.zeros((dim,), jnp.float32)
    w2 = (0.01 * jax.random.normal(kw2, (dim, width))).astype(jnp.float32)
    b2 = jnp.zeros((width,), jnp.float32)

    def ref(x):
        h = x @ w1 + b1
        h = 0.5 * h * (1.0 + jax.lax.erf(h / jnp.sqrt(2.0)))
        return h @ w2 + b2 + x

    # Case 1: evenly-divisible row count (B=2, S=8 -> M=16).
    x_a = jax.random.normal(kx, (2, 8, width), dtype=jnp.float32)
    y_a = jax.block_until_ready(adapter_forward(x_a, w1, b1, w2, b2))
    assert y_a.shape == x_a.shape
    assert jnp.allclose(y_a, ref(x_a), atol=1e-5, rtol=1e-5), "mismatch (even M)"

    # Case 2: ragged row count (B=3, S=7 -> M=21) exercising the masked
    # edge block instead of the old pad/slice path.
    x_b = jax.random.normal(kx2, (3, 7, width), dtype=jnp.float32)
    y_b = jax.block_until_ready(adapter_forward(x_b, w1, b1, w2, b2))
    assert y_b.shape == x_b.shape
    assert jnp.allclose(y_b, ref(x_b), atol=1e-5, rtol=1e-5), "mismatch (ragged M)"

    print("KERNEL_OK")
</pallas_src>

<mosaic_0001>
module attributes {stable_mosaic.version = 11 : i64} {
  func.func @adapter_kernel(%arg0: i32, %arg1: memref<8x128xf32, #tpu.memory_space<vmem>>, %arg2: memref<128x8xf32, #tpu.memory_space<vmem>>, %arg3: memref<1x8xf32, #tpu.memory_space<vmem>>, %arg4: memref<8x128xf32, #tpu.memory_space<vmem>>, %arg5: memref<1x128xf32, #tpu.memory_space<vmem>>, %arg6: memref<8x128xf32, #tpu.memory_space<vmem>>) attributes {dimension_semantics = [#tpu.dimension_semantics<parallel>], iteration_bounds = array<i64: 2>, scalar_prefetch = 0 : i64, scratch_operands = 0 : i64, tpu.core_type = #tpu.core_type<tc>, window_params = [{transform_indices = @transform_0, window_bounds = array<i64: 8, 128>}, {pipeline_mode = #tpu.pipeline_mode<synchronous>, transform_indices = @transform_1, window_bounds = array<i64: 128, 8>}, {pipeline_mode = #tpu.pipeline_mode<synchronous>, transform_indices = @transform_2, window_bounds = array<i64: 1, 8>}, {pipeline_mode = #tpu.pipeline_mode<synchronous>, transform_indices = @transform_3, window_bounds = array<i64: 8, 128>}, {pipeline_mode = #tpu.pipeline_mode<synchronous>, transform_indices = @transform_4, window_bounds = array<i64: 1, 128>}, {transform_indices = @transform_5, window_bounds = array<i64: 8, 128>}]} {
    %c0 = arith.constant 0 : index
    %c0_0 = arith.constant 0 : index
    %0 = vector.load %arg1[%c0, %c0_0] : memref<8x128xf32, #tpu.memory_space<vmem>>, vector<8x128xf32>
    %c0_1 = arith.constant 0 : index
    %c0_2 = arith.constant 0 : index
    %1 = vector.load %arg2[%c0_1, %c0_2] : memref<128x8xf32, #tpu.memory_space<vmem>>, vector<128x8xf32>
    %cst = arith.constant dense<0.000000e+00> : vector<8x8xf32>
    %2 = tpu.matmul %0, %1, %cst {dimension_numbers = #tpu.dot_dimension_numbers<[1], [0], [0], [1], [0, 0, 1, 1], [], []>} : vector<8x128xf32>, vector<128x8xf32>, vector<8x8xf32> -> vector<8x8xf32>
    %c0_3 = arith.constant 0 : index
    %c0_4 = arith.constant 0 : index
    %3 = vector.load %arg3[%c0_3, %c0_4] : memref<1x8xf32, #tpu.memory_space<vmem>>, vector<1x8xf32>
    %4 = vector.broadcast %3 : vector<1x8xf32> to vector<8x8xf32>
    %5 = arith.addf %2, %4 : vector<8x8xf32>
    %cst_5 = arith.constant 5.000000e-01 : f32
    %6 = vector.broadcast %cst_5 : f32 to vector<8x8xf32>
    %7 = arith.mulf %6, %5 : vector<8x8xf32>
    %cst_6 = arith.constant 0.707106769 : f32
    %8 = vector.broadcast %cst_6 : f32 to vector<8x8xf32>
    %9 = arith.mulf %5, %8 : vector<8x8xf32>
    %10 = math.erf %9 : vector<8x8xf32>
    %cst_7 = arith.constant 1.000000e+00 : f32
    %11 = vector.broadcast %cst_7 : f32 to vector<8x8xf32>
    %12 = arith.addf %11, %10 : vector<8x8xf32>
    %13 = arith.mulf %7, %12 : vector<8x8xf32>
    %c0_8 = arith.constant 0 : index
    %c0_9 = arith.constant 0 : index
    %14 = vector.load %arg4[%c0_8, %c0_9] : memref<8x128xf32, #tpu.memory_space<vmem>>, vector<8x128xf32>
    %cst_10 = arith.constant dense<0.000000e+00> : vector<8x128xf32>
    %15 = tpu.matmul %13, %14, %cst_10 {dimension_numbers = #tpu.dot_dimension_numbers<[1], [0], [0], [1], [0, 0, 1, 1], [], []>} : vector<8x8xf32>, vector<8x128xf32>, vector<8x128xf32> -> vector<8x128xf32>
    %c0_11 = arith.constant 0 : index
    %c0_12 = arith.constant 0 : index
    %16 = vector.load %arg5[%c0_11, %c0_12] : memref<1x128xf32, #tpu.memory_space<vmem>>, vector<1x128xf32>
    %17 = vector.broadcast %16 : vector<1x128xf32> to vector<8x128xf32>
    %18 = arith.addf %15, %17 : vector<8x128xf32>
    %19 = arith.addf %18, %0 : vector<8x128xf32>
    %c0_13 = arith.constant 0 : index
    %c0_14 = arith.constant 0 : index
    %20 = vector.load %arg6[%c0_13, %c0_14] : memref<8x128xf32, #tpu.memory_space<vmem>>, vector<8x128xf32>
    tpu.vector_store %arg6[%c0_13, %c0_14], %19 {strides = array<i32>} : memref<8x128xf32, #tpu.memory_space<vmem>>, vector<8x128xf32>,
    return
  }
  func.func @transform_0(%arg0: i32) -> (i32, i32) {
    %c0_i32 = arith.constant 0 : i32
    %c0_i32_0 = arith.constant 0 : i32
    return %arg0, %c0_i32 : i32, i32
  }
  func.func @transform_1(%arg0: i32) -> (i32, i32) {
    %c0_i32 = arith.constant 0 : i32
    %c0_i32_0 = arith.constant 0 : i32
    %c0_i32_1 = arith.constant 0 : i32
    return %c0_i32, %c0_i32_0 : i32, i32
  }
  func.func @transform_2(%arg0: i32) -> (i32, i32) {
    %c0_i32 = arith.constant 0 : i32
    %c0_i32_0 = arith.constant 0 : i32
    %c0_i32_1 = arith.constant 0 : i32
    return %c0_i32, %c0_i32_0 : i32, i32
  }
  func.func @transform_3(%arg0: i32) -> (i32, i32) {
    %c0_i32 = arith.constant 0 : i32
    %c0_i32_0 = arith.constant 0 : i32
    %c0_i32_1 = arith.constant 0 : i32
    return %c0_i32, %c0_i32_0 : i32, i32
  }
  func.func @transform_4(%arg0: i32) -> (i32, i32) {
    %c0_i32 = arith.constant 0 : i32
    %c0_i32_0 = arith.constant 0 : i32
    %c0_i32_1 = arith.constant 0 : i32
    return %c0_i32, %c0_i32_0 : i32, i32
  }
  func.func @transform_5(%arg0: i32) -> (i32, i32) {
    %c0_i32 = arith.constant 0 : i32
    %c0_i32_0 = arith.constant 0 : i32
    return %arg0, %c0_i32 : i32, i32
  }
}

</mosaic_0001>

<bundles_post_ra>
// kernel: tpu_custom_call.1
= control target key start
LH: loop header
LB: loop body
LE: loop exit
PB: predicated region body
PF: predicated region fallthrough
CT: control target
= control target key end

     0   :  { %10 = vsyncpa [#allocation3], 0  ;;  %s830_s0 = inlined_call_operand.vmem [shape: f32[16,128], index: 0, kind: input, shape index: {}]   ;;  %s831_s1 = inlined_call_operand.vmem [shape: f32[128,8], index: 1, kind: input, shape index: {}]   ;;  %s832_s2 = inlined_call_operand.vmem [shape: f32[1,8], index: 2, kind: input, shape index: {}]   ;;  %s833_s3 = inlined_call_operand.vmem [shape: f32[8,128], index: 3, kind: input, shape index: {}]   ;;  %s834_s4 = inlined_call_operand.vmem [shape: f32[1,128], index: 4, kind: input, shape index: {}]   ;;  %s835_s5 = inlined_call_operand.hbm [shape: f32[16,128], index: 5, kind: output, shape index: {}]  }
   0x1   :  { %12 = vsyncpa [#allocation3 + $0x1], 0  ;;  %s686_s18 = smov 0   ;;  %s688_s19 = smov 0  }
   0x2   :  { %s690_s20 = smov 0   ;;  %s692_s21 = smov 0  }
   0x3 LB: > { %s707_s22 = sadd.s32 4294967295, %s651_s21   ;;  %s476_s23 = sadd.s32 4294967294, %s651_s21   ;;  %s651_s21 = sphi %s692_s21, %s841_s21   ;;  %s647_s20 = sphi %s690_s20, %s840_s20   ;;  %s643_s19 = sphi %s688_s19, %s839_s19   ;;  %s639_s18 = sphi %s686_s18, %s838_s18  }
   0x4   : > { %s711_s24 = sadd.s32 1, %s651_s21   ;;  %s135_s25 = sadd.s32 1, %s647_s20 }
   0x5   : > { %s132_s26 = ssub.s32 %s651_s21, %s711_s24  ;;  %p145_p0 = scmp.ne.s32.totalorder %s647_s20, %s643_s19 }
   0x6   : > { %p133_p1 = scmp.eq.s32.totalorder %s132_s26, 0  ;;  %p146_p2 = scmp.eq.s32.totalorder %s707_s22, 1 }
   0x7   : > { %p151_p3 = scmp.ne.s32.totalorder %s643_s19, %s639_s18  ;;  %p152_p4 = scmp.eq.s32.totalorder %s476_s23, 1 }
   0x8   : > { %s722_s27 = scalar_select %p133_p1, %s647_s20, %s135_s25  }
   0x9   : > { %p724_p5 = por %p146_p2, %p145_p0  ;;  %p728_p6 = por %p152_p4, %p151_p3 }
   0xa   : > { %p479_p7 = scmp.ge.s32.totalorder %s651_s21, 1  ;;  %p189_p8 = scmp.lt.s32.totalorder %s651_s21, 3 }
   0xc   : > { %p190_p9 = pnand %p479_p7, %p189_p8 }
   0xd   : > { %p216_p10 = scmp.lt.s32.totalorder (!%p190_p9), %s707_s22, 1  ;;  %s213_s14 = sand.u32 (!%p190_p9), 1, %s643_s19  }
   0xe   : > { %193 = sbr.rel (%p190_p9) target bundleno = 477 (0x1dd), region = 40  ;;  %s480_s15 = sshll.u32 (!%p190_p9), %s213_s14, 3 }
   0xf   : > { %s486_s23 = sshll.u32 (!%p190_p9), %s707_s22, 7  ;;  %s215_s25 = scalar_lea.vmem (!%p190_p9), [#allocation2], %s480_s15 }
  0x10   : > { %s417_s26 = sshll.u32 (!%p190_p9), %s215_s25, 4  ;;  %s404_s8 = scalar_lea.sflag (!%p190_p9), [#allocation3], %s213_s14  ;;  %s418_s26 = int_to_ptr.vmem [resolvable:$true] %s417_s26 }
  0x11   : > { %s591_s9 = scalar_lea.vmem (!%p190_p9), %s418_s26, 128  ;;  %s655_s10 = smov (!%p190_p9), [#allocation2]  }
  0x12   : > { %p592_p11 = scmp.ne.s32.totalorder (!%p190_p9), %s418_s26, %s591_s9 }
  0x13   : > { %v236_v0 = vld [vmem:[%s831_s1 + $0x78] sm:$0xff]  ;;  %v653_v1 = vmov 0.0   ;;  %v235_v2 = vld [vmem:[%s831_s1 + $0x70] sm:$0xff]  ;;  %vm654_vm0 = vmmov 0   ;;  %v234_v3 = vld [vmem:[%s831_s1 + $0x68] sm:$0xff]  ;;  %s217_s11 = scalar_select %p216_p10, %s707_s22, 1 }
  0x14   : > { %508 = vmatprep.subr.mxu0 %v653_v1  ;;  %540 = vmatprep.mubr.msk.f32.mxu0 %vm654_vm0, %v653_v1  ;;  %v233_v4 = vld [vmem:[%s831_s1 + $0x60] sm:$0xff]  ;;  %v232_v5 = vld [vmem:[%s831_s1 + $0x58] sm:$0xff]  ;;  %v231_v6 = vld [vmem:[%s831_s1 + $0x50] sm:$0xff]  ;;  %vm327_vm1 = vcmask 64512   ;;  %p593_p12 = pnand %p592_p11, %p724_p5 }
  0x15   : > { %509 = vmatpush3.msra.mxu0 %v236_v0  ;;  %543 = vmatprep.subr.mxu1 %v653_v1  ;;  %v230_v7 = vld [vmem:[%s831_s1 + $0x48] sm:$0xff]  ;;  %v229_v8 = vld [vmem:[%s831_s1 + $0x40] sm:$0xff]  ;;  %v228_v9 = vld [vmem:[%s831_s1 + $0x38] sm:$0xff]  ;;  %s481_s16 = sshll.u32 %s217_s11, 3  ;;  %s595_s11 = sshll.u32 %s655_s10, 4  ;;  %s596_s11 = int_to_ptr.vmem [resolvable:$false] %s595_s11 }
  0x16   : > { %510 = vmatprep.subr.mxu0 %v653_v1  ;;  %545 = vmatprep.mubr.msk.f32.mxu1 %vm654_vm0, %v653_v1  ;;  %v227_v10 = vld [vmem:[%s831_s1 + $0x30] sm:$0xff]  ;;  %v226_v11 = vld [vmem:[%s831_s1 + $0x28] sm:$0xff]  ;;  %v225_v12 = vld [vmem:[%s831_s1 + $0x20] sm:$0xff]  ;;  %s219_s7 = scalar_lea.vmem %s830_s0, %s481_s16  ;;  %p594_p13 = pneg %p593_p12 }
  0x17   : > { %511 = vmatpush3.msra.mxu0 %v235_v2  ;;  %v224_v13 = vld [vmem:[%s831_s1 + $0x18] sm:$0xff]  ;;  %v223_v14 = vld [vmem:[%s831_s1 + $0x10] sm:$0xff]  ;;  %v222_v15 = vld [vmem:[%s831_s1 + $0x8] sm:$0xff]  ;;  %s597_s22 = scalar_lea.vmem %s596_s11, 256  ;;  %p598_p0 = scmp.lt.s32.totalorder %s418_s26, %s596_s11 }
  0x18   : > { %512 = vmatprep.subr.mxu0 %v653_v1  ;;  %v221_v16 = vld [vmem:[%s831_s1] sm:$0xff]  ;;  %p599_p1 = scmp.lt.s32.totalorder %s597_s22, %s591_s9 }
  0x19   : > { %513 = vmatpush3.msra.mxu0 %v234_v3  ;;  %v220_v17 = vld [vmem:[%s219_s7] sm:$0xff]  ;;  %s415_s7 = scalar_lea.hbm %s835_s5, %s486_s23 }
  0x1a   : > { %514 = vmatprep.subr.mxu0 %v653_v1  ;;  %v319_v18 = vld [vmem:[%s833_s3] sm:$0xff]  ;;  %p600_p2 = por %p599_p1, %p598_p0 }
  0x1b   : > { %515 = vmatpush3.msra.mxu0 %v233_v4  ;;  %544 = vmatpush3.msra.mxu1 %v319_v18  ;;  %v482_v19 = vld [vmem:[%s832_s2] ss:$0 sm:$0xff] }
  0x1c   : > { %516 = vmatprep.subr.mxu0 %v653_v1  ;;  %v483_v28 = vld [vmem:[%s834_s4] ss:$0 sm:$0xff]  ;;  %p601_p3 = pnand %p600_p2, %p594_p13 }
  0x1d   : > { %517 = vmatpush3.msra.mxu0 %v232_v5 }
  0x1e   : > { %518 = vmatprep.subr.mxu0 %v653_v1 }
  0x1f   : > { %519 = vmatpush3.msra.mxu0 %v231_v6 }
  0x20   : > { %520 = vmatprep.subr.mxu0 %v653_v1 }
  0x21   : > { %521 = vmatpush3.msra.mxu0 %v230_v7 }
  0x22   : > { %522 = vmatprep.subr.mxu0 %v653_v1 }
  0x23   : > { %523 = vmatpush3.msra.mxu0 %v229_v8 }
  0x24   : > { %524 = vmatprep.subr.mxu0 %v653_v1 }
  0x25   : > { %525 = vmatpush3.msra.mxu0 %v228_v9 }
  0x26   : > { %526 = vmatprep.subr.mxu0 %v653_v1 }
  0x27   : > { %527 = vmatpush3.msra.mxu0 %v227_v10 }
  0x28   : > { %528 = vmatprep.subr.mxu0 %v653_v1 }
  0x29   : > { %529 = vmatpush3.msra.mxu0 %v226_v11 }
  0x2a   : > { %530 = vmatprep.subr.mxu0 %v653_v1 }
  0x2b   : > { %531 = vmatpush3.msra.mxu0 %v225_v12 }
  0x2c   : > { %532 = vmatprep.subr.mxu0 %v653_v1 }
  0x2d   : > { %533 = vmatpush3.msra.mxu0 %v224_v13 }
  0x2e   : > { %534 = vmatprep.subr.mxu0 %v653_v1 }
  0x2f   : > { %535 = vmatpush3.msra.mxu0 %v223_v14 }
  0x30   : > { %536 = vmatprep.subr.mxu0 %v653_v1 }
  0x31   : > { %537 = vmatpush3.msra.mxu0 %v222_v15 }
  0x32   : > { %538 = vmatprep.subr.mxu0 %v653_v1 }
  0x33   : > { %539 = vmatpush3.msra.mxu0 %v221_v16 }
  0x34   : > { %541 = vmatmul.mubr.f32.vlgmr.msra.gmra.mxu0 %v220_v17 }
  0xf4   : > { %v310_v20 = vpop.f32.mrf.mxu0 }
  0xf5   : > { %v311_v21 = vadd.f32 %v482_v19, %v310_v20 }
  0xf6   : > { %v542_v22 = vpop.f32.mrf.mxu0 }
  0xf7   : > { %v315_v23 = vmul.f32 0.70710677, %v311_v21  ;;  %v314_v25 = vmul.f32 0.5, %v311_v21 }
  0xf9   : > { %589 = verf.f32 %v315_v23 }
 0x106   : > { %v590_v24 = vpop.eup %589 }
 0x107   : > { %v317_v26 = vadd.f32 1.0, %v590_v24 }
 0x109   : > { %v318_v27 = vmul.f32 %v317_v26, %v314_v25 }
 0x10b   : > { %546 = vmatmul.mubr.msk.f32.vlgmr.msra.gmra.mxu1 %vm327_vm1, %v318_v27 }
 0x1cb   : > { %v397_v29 = vpop.f32.mrf.mxu1 }
 0x1cc   : > { %v398_v30 = vadd.f32 %v483_v28, %v397_v29 }
 0x1cd   : > { %v547_v31 = vpop.f32.mrf.mxu1 }
 0x1ce   : > { %v401_v32 = vadd.f32 %v398_v30, %v220_v17 }
 0x1d0   : > { %402 = vst [vmem:[%s215_s25] sm:$0xff] %v401_v32 }
 0x1d1   : > { %604 = shalt.err (!%p601_p3)
}
 0x1d2   : > { %s605_s12 = scalar_lea.hbm %s415_s7, 128  ;;  %s609_s15 = scalar_lea.hbm %s835_s5, 256 }
 0x1d3   : > { %p606_p4 = scmp.ne.s32.totalorder %s415_s7, %s605_s12  ;;  %p610_p9 = scmp.lt.s32.totalorder %s415_s7, %s835_s5 }
 0x1d4   : > { %p611_p10 = scmp.lt.s32.totalorder %s609_s15, %s605_s12 }
 0x1d5   : > { %p607_p7 = pnand %p606_p4, %p724_p5 }
 0x1d6   : > { %p612_p11 = por %p611_p10, %p610_p9 }
 0x1d7   : > { %p608_p8 = pneg %p607_p7 }
 0x1d9   : > { %p613_p12 = pnand %p612_p11, %p608_p8 }
 0x1db   : > { %616 = shalt.err (!%p613_p12)
}
 0x1dc   : > { %548 = dma.vmem_to_hbm [thread:$0]  (%p724_p5), %s418_s26, 128, %s415_s7, %s404_s8  }
 0x1dd PF: > { %p554_p13 = scmp.ge.s32.totalorder %s651_s21, 2  ;;  %s429_s23 = sand.u32 1, %s639_s18  }
 0x1de   : > { %s430_s25 = scalar_lea.sflag [#allocation3], %s429_s23 }
 0x1df   : > { %p551_p0 = pnand %p554_p13, %p728_p6 }
 0x1e1   : > { %p552_p1 = pneg %p551_p0 }
 0x1e3   : > { %634 = dma.done.wait (%p552_p1), %s430_s25, 128  }
 0x1e4   : > { %636 = vsyncadd (%p552_p1), %s430_s25, 4294967168  ;;  %p15_p2 = scmp.ge.s32.totalorder %s711_s24, 4   ;;  %s838_s18 = smov %s643_s19 }
 0x1e5   : > { %s839_s19 = smov %s647_s20  ;;  %s840_s20 = smov %s722_s27 }
 0x1e6   : > { %s841_s21 = smov %s711_s24  ;;  %17 = sbr.rel (!%p15_p2) target bundleno = 3 (0x3), region = 75 }
 0x1eb   :  { %435 = vsyncpa [#allocation3], 1 }
 0x1ec   :  { %437 = vsyncpa [#allocation3 + $0x1], 1 }

</bundles_post_ra>
